<compile_context>
chip_gen: v5e
topology: v5e:2x2
jax: 0.10.0
libtpu: 0.0.40
codegen_flags: <defaults>
</compile_context>

<pallas_src>
import functools
import math

import jax
import jax.numpy as jnp
from jax.experimental import pallas as pl
from jax.experimental.pallas import tpu as pltpu


def _round_up(v, m):
    return ((v + m - 1) // m) * m


def porridge_kernel(x_ref, w1_ref, b1_ref, w2_ref, b2_ref, w3_ref, b3_ref,
                    o_ref, *, mxu_dtype):
    # x_ref: (IN, TB) — batch on the lane axis.  Weights: torch layout (out, in),
    # VMEM-resident across the whole grid.  Biases: (out, 1), f32.
    # Matmul operands are cast to `mxu_dtype` here (in VMEM, not in HBM);
    # accumulation, bias-add and ReLU stay f32.
    x = x_ref[...].astype(mxu_dtype)

    # fc1 + ReLU
    h1 = jnp.dot(w1_ref[...].astype(mxu_dtype), x,
                 preferred_element_type=jnp.float32)               # (H1, TB) f32
    h1 = jnp.maximum(h1 + b1_ref[...], 0.0)

    # fc2 + ReLU
    h2 = jnp.dot(w2_ref[...].astype(mxu_dtype), h1.astype(mxu_dtype),
                 preferred_element_type=jnp.float32)               # (H2, TB) f32
    h2 = jnp.maximum(h2 + b2_ref[...], 0.0)

    # out (no activation)
    y = jnp.dot(w3_ref[...].astype(mxu_dtype), h2.astype(mxu_dtype),
                preferred_element_type=jnp.float32)                # (OUT, TB) f32
    o_ref[...] = (y + b3_ref[...]).astype(o_ref.dtype)


def porridge_forward_fm(xt, params, *, block_b=32768, mxu_dtype=jnp.bfloat16):
    """Feature-major entry point (zero wrapper-side HBM copies of x).

    xt: (IN, B) activations; returns (OUT, B) float32 (lane-dense layout).
    """
    w1, b1, w2, b2, w3, b3 = params
    in_dim, B = xt.shape
    h1_dim, h2_dim, out_dim = w1.shape[0], w2.shape[0], w3.shape[0]

    # --- batch tile selection -------------------------------------------------
    # lane-aligned (multiple of 128), big enough to amortize the ~0.35 us/step
    # overhead, capped so 2 x (x tile + out tile) stays <= ~20 MiB of VMEM,
    # and small enough to leave >= 2 grid steps for v7x megacore sharding.
    x_item = jnp.dtype(xt.dtype).itemsize
    col_bytes = 2 * (_round_up(in_dim, 8) * x_item + _round_up(out_dim, 8) * 4)
    vmem_cap_tb = max(128, ((20 * 1024 * 1024) // col_bytes) // 128 * 128)

    b_lanes = _round_up(B, 128)
    tb = max(128, (int(block_b) // 128) * 128)          # force multiple of 128
    tb = min(tb, vmem_cap_tb, b_lanes)
    if b_lanes >= 256:                                   # keep >= 2 grid steps
        tb = min(tb, _round_up(pl.cdiv(B, 2), 128))
    nb = pl.cdiv(B, tb)                                  # ragged last block: masked

    # Weights / biases: full blocks with a constant block index -> VMEM-resident.
    full = lambda a: pl.BlockSpec(a.shape, lambda i: (0, 0))

    weight_bytes = sum(int(a.size) * a.dtype.itemsize for a in params)
    cost = pl.CostEstimate(
        flops=2 * B * (in_dim * h1_dim + h1_dim * h2_dim + h2_dim * out_dim),
        bytes_accessed=B * (in_dim * x_item + out_dim * 4) + weight_bytes,
        transcendentals=0,
    )

    kernel = functools.partial(porridge_kernel, mxu_dtype=mxu_dtype)

    return pl.pallas_call(
        kernel,
        out_shape=jax.ShapeDtypeStruct((out_dim, B), jnp.float32),
        grid_spec=pltpu.PrefetchScalarGridSpec(
            num_scalar_prefetch=0,
            grid=(nb,),
            in_specs=[
                pl.BlockSpec((in_dim, tb), lambda i: (0, i)),   # x^T, batch-tiled
                full(w1), full(b1), full(w2), full(b2), full(w3), full(b3),
            ],
            out_specs=pl.BlockSpec((out_dim, tb), lambda i: (0, i)),
        ),
        compiler_params=pltpu.CompilerParams(
            dimension_semantics=("parallel",),
            vmem_limit_bytes=32 * 1024 * 1024,
        ),
        cost_estimate=cost,
    )(xt, w1, b1, w2, b2, w3, b3)


def porridge_forward(x, params, *, block_b=32768, mxu_dtype=jnp.bfloat16,
                     xla_fallback_rows=1024):
    """Torch-layout wrapper: x (B, IN) -> (B, OUT), same semantics as the module.

    Note: this entry point pays one HBM transpose for x and one for the output;
    producers/consumers that can work feature-major should call
    `porridge_forward_fm` directly.  Batches <= `xla_fallback_rows` dispatch to
    plain XLA (custom-call launch overhead exceeds the work).
    """
    if x.shape[0] <= xla_fallback_rows:
        return reference_forward(x, params, mxu_dtype=mxu_dtype)
    yt = porridge_forward_fm(x.T, params, block_b=block_b, mxu_dtype=mxu_dtype)
    return yt.T


def init_params(key, input_dim=20, h1=8, h2=9, out_dim=2, dtype=jnp.float32):
    """torch.nn.Linear-style init (uniform +/- 1/sqrt(fan_in)), torch layout:
    weight (out, in) cast to `dtype`, bias (out, 1) kept float32."""
    ks = jax.random.split(key, 6)

    def lin(kw, kb, fan_in, fan_out):
        bound = 1.0 / math.sqrt(fan_in)
        w = jax.random.uniform(kw, (fan_out, fan_in), jnp.float32, -bound, bound)
        b = jax.random.uniform(kb, (fan_out, 1), jnp.float32, -bound, bound)
        return w.astype(dtype), b

    w1, b1 = lin(ks[0], ks[1], input_dim, h1)
    w2, b2 = lin(ks[2], ks[3], h1, h2)
    w3, b3 = lin(ks[4], ks[5], h2, out_dim)
    return (w1, b1, w2, b2, w3, b3)


def reference_forward(x, params, *, mxu_dtype=jnp.float32):
    """Plain-XLA reference with the same precision policy as the kernel
    (matmul operands in `mxu_dtype`, f32 accumulation, f32 bias/ReLU)."""
    w1, b1, w2, b2, w3, b3 = params

    def lin(a, w, b):
        return jnp.dot(a.astype(mxu_dtype), w.T.astype(mxu_dtype),
                       preferred_element_type=jnp.float32) + b.T

    h = jnp.maximum(lin(x, w1, b1), 0.0)
    h = jnp.maximum(lin(h, w2, b2), 0.0)
    return lin(h, w3, b3)


if __name__ == "__main__":
    key = jax.random.PRNGKey(0)
    k_x1, k_x2, k_p = jax.random.split(key, 3)
    IN, H1, H2, OUT = 20, 8, 9, 2

    params_f32 = init_params(k_p, IN, H1, H2, OUT, dtype=jnp.float32)

    # --- tiny batch, exact f32 MXU path (force Pallas; no XLA fallback)
    x_small = jax.random.normal(k_x1, (16, IN), jnp.float32)
    out = jax.block_until_ready(
        porridge_forward(x_small, params_f32, mxu_dtype=jnp.float32,
                         xla_fallback_rows=0))
    ref = reference_forward(x_small, params_f32, mxu_dtype=jnp.float32)
    assert out.shape == (16, OUT), out.shape
    assert jnp.allclose(out, ref, atol=1e-5, rtol=1e-5), "f32 small-batch mismatch"

    # --- multi-block batch with ragged final block (300 = 256 + 44),
    #     default in-kernel bf16 MXU operands, f32 accumulation/bias/ReLU
    x_big = jax.random.normal(k_x2, (300, IN), jnp.float32)
    out = jax.block_until_ready(
        porridge_forward(x_big, params_f32, xla_fallback_rows=0))
    ref = reference_forward(x_big, params_f32, mxu_dtype=jnp.bfloat16)
    assert out.shape == (300, OUT), out.shape
    assert jnp.allclose(out, ref, atol=2e-3, rtol=2e-3), "bf16-MXU mismatch"

    # --- bf16-stored weights, feature-major (zero-copy) entry point,
    #     small block_b to exercise a 3-step grid + masked final block
    params_bf16 = init_params(k_p, IN, H1, H2, OUT, dtype=jnp.bfloat16)
    yt = jax.block_until_ready(
        porridge_forward_fm(x_big.T, params_bf16, block_b=128))
    ref = reference_forward(x_big, params_bf16, mxu_dtype=jnp.bfloat16)
    assert yt.shape == (OUT, 300), yt.shape
    assert jnp.allclose(yt.T, ref, atol=2e-3, rtol=2e-3), "bf16-weights mismatch"

    print("KERNEL_OK")
</pallas_src>

<mosaic_0001>
module attributes {stable_mosaic.version = 11 : i64} {
  func.func @porridge_kernel(%arg0: i32, %arg1: memref<20x128xf32, #tpu.memory_space<vmem>>, %arg2: memref<8x20xf32, #tpu.memory_space<vmem>>, %arg3: memref<8x1xf32, #tpu.memory_space<vmem>>, %arg4: memref<9x8xf32, #tpu.memory_space<vmem>>, %arg5: memref<9x1xf32, #tpu.memory_space<vmem>>, %arg6: memref<2x9xf32, #tpu.memory_space<vmem>>, %arg7: memref<2x1xf32, #tpu.memory_space<vmem>>, %arg8: memref<2x128xf32, #tpu.memory_space<vmem>>) attributes {dimension_semantics = [#tpu.dimension_semantics<parallel>], iteration_bounds = array<i64: 1>, scalar_prefetch = 0 : i64, scratch_operands = 0 : i64, tpu.core_type = #tpu.core_type<tc>, window_params = [{transform_indices = @transform_0, window_bounds = array<i64: 20, 128>}, {pipeline_mode = #tpu.pipeline_mode<synchronous>, transform_indices = @transform_1, window_bounds = array<i64: 8, 20>}, {pipeline_mode = #tpu.pipeline_mode<synchronous>, transform_indices = @transform_2, window_bounds = array<i64: 8, 1>}, {pipeline_mode = #tpu.pipeline_mode<synchronous>, transform_indices = @transform_3, window_bounds = array<i64: 9, 8>}, {pipeline_mode = #tpu.pipeline_mode<synchronous>, transform_indices = @transform_4, window_bounds = array<i64: 9, 1>}, {pipeline_mode = #tpu.pipeline_mode<synchronous>, transform_indices = @transform_5, window_bounds = array<i64: 2, 9>}, {pipeline_mode = #tpu.pipeline_mode<synchronous>, transform_indices = @transform_6, window_bounds = array<i64: 2, 1>}, {transform_indices = @transform_7, window_bounds = array<i64: 2, 128>}]} {
    %c0 = arith.constant 0 : index
    %c0_0 = arith.constant 0 : index
    %0 = vector.load %arg1[%c0, %c0_0] : memref<20x128xf32, #tpu.memory_space<vmem>>, vector<20x128xf32>
    %c0_1 = arith.constant 0 : index
    %c0_2 = arith.constant 0 : index
    %1 = vector.load %arg2[%c0_1, %c0_2] : memref<8x20xf32, #tpu.memory_space<vmem>>, vector<8x20xf32>
    %cst = arith.constant dense<0.000000e+00> : vector<8x128xf32>
    %2 = tpu.matmul %1, %0, %cst {dimension_numbers = #tpu.dot_dimension_numbers<[1], [0], [0], [1], [0, 0, 1, 1], [], []>} : vector<8x20xf32>, vector<20x128xf32>, vector<8x128xf32> -> vector<8x128xf32>
    %c0_3 = arith.constant 0 : index
    %c0_4 = arith.constant 0 : index
    %3 = vector.load %arg3[%c0_3, %c0_4] : memref<8x1xf32, #tpu.memory_space<vmem>>, vector<8x1xf32>
    %4 = vector.broadcast %3 : vector<8x1xf32> to vector<8x128xf32>
    %5 = arith.addf %2, %4 : vector<8x128xf32>
    %cst_5 = arith.constant 0.000000e+00 : f32
    %6 = vector.broadcast %cst_5 : f32 to vector<8x128xf32>
    %7 = arith.maximumf %5, %6 : vector<8x128xf32>
    %c0_6 = arith.constant 0 : index
    %c0_7 = arith.constant 0 : index
    %8 = vector.load %arg4[%c0_6, %c0_7] : memref<9x8xf32, #tpu.memory_space<vmem>>, vector<9x8xf32>
    %cst_8 = arith.constant dense<0.000000e+00> : vector<9x128xf32>
    %9 = tpu.matmul %8, %7, %cst_8 {dimension_numbers = #tpu.dot_dimension_numbers<[1], [0], [0], [1], [0, 0, 1, 1], [], []>} : vector<9x8xf32>, vector<8x128xf32>, vector<9x128xf32> -> vector<9x128xf32>
    %c0_9 = arith.constant 0 : index
    %c0_10 = arith.constant 0 : index
    %10 = vector.load %arg5[%c0_9, %c0_10] : memref<9x1xf32, #tpu.memory_space<vmem>>, vector<9x1xf32>
    %11 = vector.broadcast %10 : vector<9x1xf32> to vector<9x128xf32>
    %12 = arith.addf %9, %11 : vector<9x128xf32>
    %cst_11 = arith.constant 0.000000e+00 : f32
    %13 = vector.broadcast %cst_11 : f32 to vector<9x128xf32>
    %14 = arith.maximumf %12, %13 : vector<9x128xf32>
    %c0_12 = arith.constant 0 : index
    %c0_13 = arith.constant 0 : index
    %15 = vector.load %arg6[%c0_12, %c0_13] : memref<2x9xf32, #tpu.memory_space<vmem>>, vector<2x9xf32>
    %cst_14 = arith.constant dense<0.000000e+00> : vector<2x128xf32>
    %16 = tpu.matmul %15, %14, %cst_14 {dimension_numbers = #tpu.dot_dimension_numbers<[1], [0], [0], [1], [0, 0, 1, 1], [], []>} : vector<2x9xf32>, vector<9x128xf32>, vector<2x128xf32> -> vector<2x128xf32>
    %c0_15 = arith.constant 0 : index
    %c0_16 = arith.constant 0 : index
    %17 = vector.load %arg7[%c0_15, %c0_16] : memref<2x1xf32, #tpu.memory_space<vmem>>, vector<2x1xf32>
    %18 = vector.broadcast %17 : vector<2x1xf32> to vector<2x128xf32>
    %19 = arith.addf %16, %18 : vector<2x128xf32>
    %c0_17 = arith.constant 0 : index
    %c0_18 = arith.constant 0 : index
    %20 = vector.load %arg8[%c0_17, %c0_18] : memref<2x128xf32, #tpu.memory_space<vmem>>, vector<2x128xf32>
    tpu.vector_store %arg8[%c0_17, %c0_18], %19 {strides = array<i32>} : memref<2x128xf32, #tpu.memory_space<vmem>>, vector<2x128xf32>,
    return
  }
  func.func @transform_0(%arg0: i32) -> (i32, i32) {
    %c0_i32 = arith.constant 0 : i32
    %c0_i32_0 = arith.constant 0 : i32
    return %c0_i32, %arg0 : i32, i32
  }
  func.func @transform_1(%arg0: i32) -> (i32, i32) {
    %c0_i32 = arith.constant 0 : i32
    %c0_i32_0 = arith.constant 0 : i32
    %c0_i32_1 = arith.constant 0 : i32
    return %c0_i32, %c0_i32_0 : i32, i32
  }
  func.func @transform_2(%arg0: i32) -> (i32, i32) {
    %c0_i32 = arith.constant 0 : i32
    %c0_i32_0 = arith.constant 0 : i32
    %c0_i32_1 = arith.constant 0 : i32
    return %c0_i32, %c0_i32_0 : i32, i32
  }
  func.func @transform_3(%arg0: i32) -> (i32, i32) {
    %c0_i32 = arith.constant 0 : i32
    %c0_i32_0 = arith.constant 0 : i32
    %c0_i32_1 = arith.constant 0 : i32
    return %c0_i32, %c0_i32_0 : i32, i32
  }
  func.func @transform_4(%arg0: i32) -> (i32, i32) {
    %c0_i32 = arith.constant 0 : i32
    %c0_i32_0 = arith.constant 0 : i32
    %c0_i32_1 = arith.constant 0 : i32
    return %c0_i32, %c0_i32_0 : i32, i32
  }
  func.func @transform_5(%arg0: i32) -> (i32, i32) {
    %c0_i32 = arith.constant 0 : i32
    %c0_i32_0 = arith.constant 0 : i32
    %c0_i32_1 = arith.constant 0 : i32
    return %c0_i32, %c0_i32_0 : i32, i32
  }
  func.func @transform_6(%arg0: i32) -> (i32, i32) {
    %c0_i32 = arith.constant 0 : i32
    %c0_i32_0 = arith.constant 0 : i32
    %c0_i32_1 = arith.constant 0 : i32
    return %c0_i32, %c0_i32_0 : i32, i32
  }
  func.func @transform_7(%arg0: i32) -> (i32, i32) {
    %c0_i32 = arith.constant 0 : i32
    %c0_i32_0 = arith.constant 0 : i32
    return %c0_i32, %arg0 : i32, i32
  }
}

</mosaic_0001>

<bundles_post_ra>
// kernel: tpu_custom_call.1
= control target key start
LH: loop header
LB: loop body
LE: loop exit
PB: predicated region body
PF: predicated region fallthrough
CT: control target
= control target key end

     0   :  { %vm41_vm0 = vcmask 1043456   ;;  %v201_v4 = vmov 0   ;;  %s279_s0 = inlined_call_operand.vmem [shape: f32[20,16], index: 0, kind: input, shape index: {}]   ;;  %s280_s1 = inlined_call_operand.vmem [shape: f32[8,20], index: 1, kind: input, shape index: {}]   ;;  %s281_s2 = inlined_call_operand.vmem [shape: f32[8,1], index: 2, kind: input, shape index: {}]   ;;  %s282_s3 = inlined_call_operand.vmem [shape: f32[9,8], index: 3, kind: input, shape index: {}]   ;;  %s283_s4 = inlined_call_operand.vmem [shape: f32[9,1], index: 4, kind: input, shape index: {}]   ;;  %s284_s5 = inlined_call_operand.vmem [shape: f32[2,9], index: 5, kind: input, shape index: {}]   ;;  %s285_s6 = inlined_call_operand.vmem [shape: f32[2,1], index: 6, kind: input, shape index: {}]   ;;  %s286_s7 = inlined_call_operand.hbm [shape: f32[2,16], index: 7, kind: output, shape index: {}]  }
   0x1   :  { %v29_v0 = vld [vmem:[%s279_s0 + $0x10] sm:$0xf]  ;;  %v28_v1 = vld [vmem:[%s279_s0 + $0x8] sm:$0xff]  ;;  %v31_v2 = vld [vmem:[%s281_s2] sm:$0xff]  ;;  %173 = vset.pattern.permute.xlu0 %v201_v4  ;;  %174 = vset.pattern.permute.xlu1 %v201_v4 }
   0x2   :  { %164 = vmatpush.msk.msra.mxu0 %vm41_vm0, %v29_v0  ;;  %v27_v3 = vld [vmem:[%s279_s0] sm:$0xff] }
   0x3   :  { %12 = vsyncpa [#allocation3], 0  ;;  %v30_v5 = vld [vmem:[%s280_s1] sm:$0xff]  ;;  %vm37_vm1 = vcmask 162816   ;;  %34 = vperm.xlu0 %173, %v31_v2   ;;  %v69_v6 = vld [vmem:[%s283_s4 + $0x8] sm:$0x1] }
   0x4   :  { %59 = vmatpush.msra.mxu0 %v28_v1  ;;  %v68_v7 = vld [vmem:[%s283_s4] sm:$0xff]  ;;  %v67_v13 = vld [vmem:[%s282_s3 + $0x8] sm:$0x1]  ;;  %vm80_vm2 = vcmask 64512   ;;  %vm123_vm3 = vcmask 1040384   ;;  %vm119_vm4 = vcmask 72704  }
   0x5   :  { %72 = vperm.xlu1 %174, %v68_v7   ;;  %v113_v8 = vld [vmem:[%s285_s6] sm:$0x3]  ;;  %s155_s21 = sshll.u32 %s286_s7, 4  ;;  %s156_s21 = int_to_ptr.hbm [resolvable:$true] %s155_s21 }
   0x6   :  { %60 = vmatpush.msra.mxu0 %v27_v3  ;;  %v66_v14 = vld [vmem:[%s282_s3] sm:$0xff]  ;;  %s202_s3 = smov [#allocation2]  }
   0x7   :  { %165 = vmatmul.msk.f32.vlgmr.msra.gmra.mxu0 %vm37_vm1, %v30_v5  ;;  %v112_v23 = vld [vmem:[%s284_s5] sm:$0x3]  ;;  %s153_s18 = sshll.u32 %s202_s3, 4  ;;  %s154_s18 = int_to_ptr.vmem [resolvable:$true] %s153_s18 }
   0xb   :  { %77 = vperm.xlu0 %173, %v69_v6  }
   0xd   :  { %116 = vperm.xlu1 %174, %v113_v8  }
  0x75   :  { %v35_v9 = vpop.permute.xlu0 %34 }
  0x77   :  { %v73_v16 = vpop.permute.xlu1 %72 }
  0x7d   :  { %v78_v18 = vpop.permute.xlu0 %77 }
  0x7f   :  { %v117_v24 = vpop.permute.xlu1 %116 }
  0x84   :  { %v62_v10 = vpop.f32.mrf.mxu0 }
  0x85   :  { %v63_v11 = vadd.f32 %v62_v10, %v35_v9 }
  0x87   :  { %v65_v12 = vmax.f32 %v63_v11, 0.0 }
  0x89   :  { %102 = vmatpush.msra.mxu1 %v65_v12  ;;  %170 = vmatpush.msra.mxu3 %v65_v12 }
  0x8a   :  { %167 = vmatmul.msk.f32.vlgmr.msra.gmra.mxu3 %vm80_vm2, %v67_v13  ;;  %166 = vmatmul.msk.f32.vlgmr.msra.gmra.mxu1 %vm80_vm2, %v66_v14 }
 0x107   :  { %v104_v15 = vpop.f32.mrf.mxu1 }
 0x108   :  { %v105_v17 = vadd.f32 %v104_v15, %v73_v16 }
 0x10a   :  { %v110_v22 = vmax.f32 %v105_v17, 0.0 }
 0x10d   :  { %v107_v19 = vpop.f32.mrf.mxu3 }
 0x10e   :  { %v108_v20 = vadd.f32 %v107_v19, %v78_v18 }
 0x110   :  { %v111_v21 = vmax.f32 %v108_v20, 0.0 }
 0x112   :  { %168 = vmatpush.msk.msra.mxu2 %vm123_vm3, %v111_v21 }
 0x114   :  { %142 = vmatpush.msra.mxu2 %v110_v22 }
 0x115   :  { %169 = vmatmul.msk.f32.vlgmr.msra.gmra.mxu2 %vm119_vm4, %v112_v23 }
 0x198   :  { %v144_v25 = vpop.f32.mrf.mxu2 }
 0x199   :  { %v145_v26 = vadd.f32 %v144_v25, %v117_v24 }
 0x19b   :  { %147 = vst [vmem:[#allocation2] sm:$0x3] %v145_v26 }
 0x19c   :  { %158 = dma.vmem_to_hbm [thread:$0]  %s154_s18, 32, %s156_s21, [#allocation3]  }
 0x19d   :  { %199 = dma.done.wait [#allocation3], 32  }
 0x19e   :  { %200 = vsyncadd [#allocation3], 4294967264 }
 0x19f   :  { %163 = vsyncpa [#allocation3], 1 }

</bundles_post_ra>
